<compile_context>
chip_gen: v5e
topology: v5e:2x2
jax: 0.10.0
libtpu: 0.0.40
codegen_flags: <defaults>
</compile_context>

<pallas_src>
import math
import functools

import jax
import jax.numpy as jnp
from jax.experimental import pallas as pl
from jax.experimental.pallas import tpu as pltpu

# ---- ArcFace hyper-parameters (match the PyTorch module defaults) ----
S_SCALE = 30.0
MARGIN = 0.5
COS_M = math.cos(MARGIN)
SIN_M = math.sin(MARGIN)
TH = math.cos(math.pi - MARGIN)
MM = math.sin(math.pi - MARGIN) * MARGIN
EPS = 1e-12  # F.normalize default eps
NEG_BIG = -1e30


def _round_up(x, m):
    return (x + m - 1) // m * m


def _chip_hint():
    """Best-effort chip detection for tile/padding choices (safe fallback)."""
    try:
        kind = jax.devices()[0].device_kind.lower()
    except Exception:
        kind = ""
    wide_mxu = ("v6" in kind) or ("v7" in kind)   # 2x256^2 MXU
    is_v7 = "v7" in kind                           # 2 TensorCores / chip
    return wide_mxu, is_v7


# --------------- Kernel 1: backbone projection + feature L2-normalize --------
def backbone_kernel(x_ref, wbb_ref, bbb_ref, feat_ref, acc_ref):
    k = pl.program_id(1)

    @pl.when(k == 0)
    def _():
        acc_ref[...] = jnp.zeros_like(acc_ref)

    # bf16 x bf16 -> f32 accumulate on the MXU.
    acc_ref[...] += jnp.dot(x_ref[...], wbb_ref[...],
                            preferred_element_type=jnp.float32)

    @pl.when(k == pl.num_programs(1) - 1)
    def _():
        feats = acc_ref[...] + bbb_ref[...]                       # (TB, Fp) f32
        ssq = jnp.sum(feats * feats, axis=1, keepdims=True)
        # x / max(||x||, eps)  ==  x * rsqrt(max(||x||^2, eps^2))
        inv_norm = jax.lax.rsqrt(jnp.maximum(ssq, EPS * EPS))
        # Emit bf16 directly (kernel 2 consumes bf16 on the MXU anyway).
        feat_ref[...] = (feats * inv_norm).astype(feat_ref.dtype)


# --------------- Kernel 2: ArcFace margin + streaming cross-entropy ----------
def arcface_kernel(f_ref, w_ref, lab_ref, loss_ref, m_ref, l_ref, t_ref,
                   *, num_classes, mask_pad_cols):
    j = pl.program_id(1)
    tn = w_ref.shape[1]

    @pl.when(j == 0)
    def _():
        m_ref[...] = jnp.full_like(m_ref, NEG_BIG)
        l_ref[...] = jnp.zeros_like(l_ref)
        t_ref[...] = jnp.zeros_like(t_ref)

    # Both operands already bf16; f32 accumulation on the MXU.
    cosine = jnp.dot(f_ref[...], w_ref[...],
                     preferred_element_type=jnp.float32)          # (TB, TN)

    labels = lab_ref[...]                                         # (TB, 1) i32
    col = jax.lax.broadcasted_iota(jnp.int32, cosine.shape, 1) + j * tn
    tgt_mask = col == labels                                      # (TB, TN)

    # Margin math only on the (B, 1) target cosine of this class tile.
    tgt_cos = jnp.sum(jnp.where(tgt_mask, cosine, 0.0), axis=1, keepdims=True)
    has_tgt = jnp.sum(tgt_mask.astype(jnp.float32), axis=1, keepdims=True)
    sine = jnp.sqrt(jnp.clip(1.0 - tgt_cos * tgt_cos, 0.0, 1.0))
    phi = tgt_cos * COS_M - sine * SIN_M
    phi = jnp.where(tgt_cos > TH, phi, tgt_cos - MM)

    logits = jnp.where(tgt_mask, phi, cosine) * S_SCALE
    if mask_pad_cols:
        # Only the last class tile contains padded columns; statically skipped
        # entirely when Np == N.
        logits = jnp.where(col < num_classes, logits, NEG_BIG)

    # Running target logit (each row's target lives in exactly one class tile).
    t_ref[...] += has_tgt * phi * S_SCALE

    # Online log-sum-exp across class tiles.
    m_prev = m_ref[...]
    m_new = jnp.maximum(m_prev, jnp.max(logits, axis=1, keepdims=True))
    l_ref[...] = (l_ref[...] * jnp.exp(m_prev - m_new)
                  + jnp.sum(jnp.exp(logits - m_new), axis=1, keepdims=True))
    m_ref[...] = m_new

    @pl.when(j == pl.num_programs(1) - 1)
    def _():
        loss_ref[...] = m_ref[...] + jnp.log(l_ref[...]) - t_ref[...]


# ------------------------------- wrapper --------------------------------------
def fm_forward(images, labels, w_backbone, b_backbone, w_head,
               *, tb=128, tk=2048, tn=512):
    """images: (B, C, H, W); labels: (B,) int32.

    w_backbone: (C*H*W, feature_size)
    b_backbone: (1, feature_size)
    w_head:     (feature_size, num_classes)   (transposed ArcFace weight)
    Returns scalar cross-entropy loss (float32).
    """
    B = images.shape[0]
    K = math.prod(images.shape[1:])
    F = w_backbone.shape[1]
    N = w_head.shape[1]

    wide_mxu, is_v7 = _chip_hint()
    lane_mult = 256 if wide_mxu else 128   # v6e/v7x MXU is 2x256^2, v5e 4x128^2

    # Batch tile: as big as possible (weights are re-streamed once per batch
    # tile, so fewer batch tiles => less HBM traffic), clamped to the
    # 8-rounded true batch.  On v7x keep >=2 batch tiles so both TCs are busy.
    tb = min(tb, _round_up(B, 8))
    if is_v7 and tb > 64 and _round_up(B, 8) > 64:
        tb = 64
    Bp = _round_up(B, tb)

    tk = min(tk, _round_up(K, 128))
    Kp = _round_up(K, tk)
    Fp = _round_up(F, lane_mult)
    tn = min(tn, _round_up(N, lane_mult))
    Np = _round_up(N, tn)
    n_btiles = Bp // tb

    # ---- layout prep: pad to MXU-friendly shapes, bf16 matmul operands,
    # pre-normalize the ArcFace weight once (hoisted out of the hot kernel) ----
    x = images.reshape(B, K).astype(jnp.float32)
    x = jnp.pad(x, ((0, Bp - B), (0, Kp - K))).astype(jnp.bfloat16)

    wbb = jnp.pad(w_backbone.astype(jnp.float32),
                  ((0, Kp - K), (0, Fp - F))).astype(jnp.bfloat16)
    bbb = jnp.pad(b_backbone.astype(jnp.float32).reshape(1, F),
                  ((0, 0), (0, Fp - F)))

    w = w_head.astype(jnp.float32)
    w_norm = jnp.sqrt(jnp.sum(w * w, axis=0, keepdims=True))
    w_hat = w / jnp.maximum(w_norm, EPS)
    w_hat = jnp.pad(w_hat, ((0, Fp - F), (0, Np - N))).astype(jnp.bfloat16)

    # NOTE: padded batch rows inherit label 0 (a real class).  That is safe
    # only because rows >= B are sliced off before the mean below; keep that
    # invariant if this reduction is ever moved into the kernel.
    lab = jnp.pad(labels.astype(jnp.int32).reshape(B, 1), ((0, Bp - B), (0, 0)))

    # ---- kernel 1: tiled backbone matmul (K-reduction) + L2 normalize ----
    bb_cost = pl.CostEstimate(
        flops=2 * Bp * Kp * Fp,
        transcendentals=Bp,
        bytes_accessed=(Bp * Kp * 2                 # activations (bf16)
                        + n_btiles * Kp * Fp * 2    # weight re-streamed / tile
                        + n_btiles * Fp * 4         # bias
                        + Bp * Fp * 2))             # bf16 features out
    f_hat = pl.pallas_call(
        backbone_kernel,
        out_shape=jax.ShapeDtypeStruct((Bp, Fp), jnp.bfloat16),
        grid_spec=pltpu.PrefetchScalarGridSpec(
            num_scalar_prefetch=0,
            grid=(Bp // tb, Kp // tk),
            in_specs=[
                pl.BlockSpec((tb, tk), lambda i, k: (i, k)),
                pl.BlockSpec((tk, Fp), lambda i, k: (k, 0)),
                pl.BlockSpec((1, Fp), lambda i, k: (0, 0)),
            ],
            out_specs=pl.BlockSpec((tb, Fp), lambda i, k: (i, 0)),
            scratch_shapes=[pltpu.VMEM((tb, Fp), jnp.float32)]),
        compiler_params=pltpu.CompilerParams(
            dimension_semantics=("parallel", "arbitrary"),
            vmem_limit_bytes=48 * 1024 * 1024),
        cost_estimate=bb_cost,
    )(x, wbb, bbb)

    # ---- kernel 2: ArcFace head, class axis streamed with online LSE ----
    head_cost = pl.CostEstimate(
        flops=2 * Bp * Fp * Np + 12 * Bp * Np,
        transcendentals=Bp * Np,
        bytes_accessed=(Bp * Fp * 2                 # bf16 features
                        + n_btiles * Fp * Np * 2    # head weight re-streamed
                        + Bp * 4 + Bp * 4))         # labels + per-row loss
    per_row = pl.pallas_call(
        functools.partial(arcface_kernel, num_classes=N,
                          mask_pad_cols=(Np != N)),
        out_shape=jax.ShapeDtypeStruct((Bp, 1), jnp.float32),
        grid_spec=pltpu.PrefetchScalarGridSpec(
            num_scalar_prefetch=0,
            grid=(Bp // tb, Np // tn),
            in_specs=[
                pl.BlockSpec((tb, Fp), lambda i, j: (i, 0)),
                pl.BlockSpec((Fp, tn), lambda i, j: (0, j)),
                pl.BlockSpec((tb, 1), lambda i, j: (i, 0)),
            ],
            out_specs=pl.BlockSpec((tb, 1), lambda i, j: (i, 0)),
            scratch_shapes=[pltpu.VMEM((tb, 1), jnp.float32)] * 3),
        compiler_params=pltpu.CompilerParams(
            dimension_semantics=("parallel", "arbitrary"),
            vmem_limit_bytes=48 * 1024 * 1024),
        cost_estimate=head_cost,
    )(f_hat, w_hat, lab)

    # Padded batch rows are sliced off; mean uses the true batch size.
    return jnp.sum(per_row[:B, 0]) / B


# ------------------------- params / reference / demo --------------------------
def init_params(key, in_dim, feature_size, num_classes):
    k1, k2 = jax.random.split(key)
    # Synthetic "backbone" projection (deterministic stand-in for timm model).
    w_bb = jax.random.normal(k1, (in_dim, feature_size), jnp.float32) * 0.02
    b_bb = jnp.zeros((1, feature_size), jnp.float32)
    # ArcFace weight: xavier_uniform_ over (out, in), stored transposed.
    bound = math.sqrt(6.0 / (feature_size + num_classes))
    w_head_t = jax.random.uniform(
        k2, (feature_size, num_classes), jnp.float32, minval=-bound, maxval=bound)
    return w_bb, b_bb, w_head_t


def fm_forward_ref(images, labels, w_backbone, b_backbone, w_head):
    """Pure-JAX f32 reference of the same forward pass."""
    B = images.shape[0]
    x = images.reshape(B, -1).astype(jnp.float32)
    feats = x @ w_backbone + b_backbone
    f_hat = feats / jnp.maximum(
        jnp.linalg.norm(feats, axis=1, keepdims=True), EPS)
    w_hat = w_head / jnp.maximum(
        jnp.linalg.norm(w_head, axis=0, keepdims=True), EPS)
    cosine = f_hat @ w_hat
    sine = jnp.sqrt(jnp.clip(1.0 - cosine * cosine, 0.0, 1.0))
    phi = cosine * COS_M - sine * SIN_M
    phi = jnp.where(cosine > TH, phi, cosine - MM)
    one_hot = jax.nn.one_hot(labels, w_head.shape[1], dtype=jnp.float32)
    logits = (one_hot * phi + (1.0 - one_hot) * cosine) * S_SCALE
    lse = jax.scipy.special.logsumexp(logits, axis=1)
    tgt = jnp.sum(one_hot * logits, axis=1)
    return jnp.mean(lse - tgt)


if __name__ == "__main__":
    key = jax.random.PRNGKey(0)
    kx, kl, kp = jax.random.split(key, 3)

    B, C, H, W = 2, 4, 16, 16
    feature_size = 32
    num_classes = 200          # padded -> exercises the padded-class mask path

    images = jax.random.normal(kx, (B, C, H, W), jnp.float32)
    labels = jax.random.randint(kl, (B,), 0, num_classes, jnp.int32)
    w_bb, b_bb, w_head_t = init_params(kp, C * H * W, feature_size, num_classes)

    loss = fm_forward(images, labels, w_bb, b_bb, w_head_t)
    jax.block_until_ready(loss)

    assert loss.shape == () and bool(jnp.isfinite(loss)), loss
    ref = fm_forward_ref(images, labels, w_bb, b_bb, w_head_t)
    assert abs(float(loss) - float(ref)) < 0.05 * abs(float(ref)) + 0.05, (loss, ref)
    print("KERNEL_OK")
</pallas_src>

<mosaic_0001>
module attributes {stable_mosaic.version = 11 : i64} {
  func.func @backbone_kernel(%arg0: i32, %arg1: i32, %arg2: memref<8x1024xbf16, #tpu.memory_space<vmem>>, %arg3: memref<1024x128xbf16, #tpu.memory_space<vmem>>, %arg4: memref<1x128xf32, #tpu.memory_space<vmem>>, %arg5: memref<8x128xbf16, #tpu.memory_space<vmem>>, %arg6: memref<8x128xf32, #tpu.memory_space<vmem>>) attributes {dimension_semantics = [#tpu.dimension_semantics<parallel>, #tpu.dimension_semantics<arbitrary>], iteration_bounds = array<i64: 1, 1>, scalar_prefetch = 0 : i64, scratch_operands = 1 : i64, tpu.core_type = #tpu.core_type<tc>, window_params = [{transform_indices = @transform_0, window_bounds = array<i64: 8, 1024>}, {transform_indices = @transform_1, window_bounds = array<i64: 1024, 128>}, {pipeline_mode = #tpu.pipeline_mode<synchronous>, transform_indices = @transform_2, window_bounds = array<i64: 1, 128>}, {transform_indices = @transform_3, window_bounds = array<i64: 8, 128>}]} {
    %c0_i32 = arith.constant 0 : i32
    %0 = arith.cmpi eq, %arg1, %c0_i32 : i32
    %1 = arith.extui %0 : i1 to i32
    %c0_i32_0 = arith.constant 0 : i32
    %2 = arith.cmpi ne, %1, %c0_i32_0 : i32
    scf.if %2 {
      %cst_10 = arith.constant 0.000000e+00 : f32
      %12 = vector.broadcast %cst_10 : f32 to vector<8x128xf32>
      %c0_11 = arith.constant 0 : index
      %c0_12 = arith.constant 0 : index
      %13 = vector.load %arg6[%c0_11, %c0_12] : memref<8x128xf32, #tpu.memory_space<vmem>>, vector<8x128xf32>
      tpu.vector_store %arg6[%c0_11, %c0_12], %12 {strides = array<i32>} : memref<8x128xf32, #tpu.memory_space<vmem>>, vector<8x128xf32>,
    } else {
    }
    %c0 = arith.constant 0 : index
    %c0_1 = arith.constant 0 : index
    %3 = vector.load %arg6[%c0, %c0_1] : memref<8x128xf32, #tpu.memory_space<vmem>>, vector<8x128xf32>
    %c0_2 = arith.constant 0 : index
    %c0_3 = arith.constant 0 : index
    %4 = vector.load %arg2[%c0_2, %c0_3] : memref<8x1024xbf16, #tpu.memory_space<vmem>>, vector<8x1024xbf16>
    %c0_4 = arith.constant 0 : index
    %c0_5 = arith.constant 0 : index
    %5 = vector.load %arg3[%c0_4, %c0_5] : memref<1024x128xbf16, #tpu.memory_space<vmem>>, vector<1024x128xbf16>
    %cst = arith.constant dense<0.000000e+00> : vector<8x128xf32>
    %6 = tpu.matmul %4, %5, %cst {dimension_numbers = #tpu.dot_dimension_numbers<[1], [0], [0], [1], [0, 0, 1, 1], [], []>} : vector<8x1024xbf16>, vector<1024x128xbf16>, vector<8x128xf32> -> vector<8x128xf32>
    %7 = arith.addf %3, %6 : vector<8x128xf32>
    %c0_6 = arith.constant 0 : index
    %c0_7 = arith.constant 0 : index
    %8 = vector.load %arg6[%c0_6, %c0_7] : memref<8x128xf32, #tpu.memory_space<vmem>>, vector<8x128xf32>
    tpu.vector_store %arg6[%c0_6, %c0_7], %7 {strides = array<i32>} : memref<8x128xf32, #tpu.memory_space<vmem>>, vector<8x128xf32>,
    %c0_i32_8 = arith.constant 0 : i32
    %9 = arith.cmpi eq, %arg1, %c0_i32_8 : i32
    %10 = arith.extui %9 : i1 to i32
    %c0_i32_9 = arith.constant 0 : i32
    %11 = arith.cmpi ne, %10, %c0_i32_9 : i32
    scf.if %11 {
      %c0_10 = arith.constant 0 : index
      %c0_11 = arith.constant 0 : index
      %12 = vector.load %arg6[%c0_10, %c0_11] : memref<8x128xf32, #tpu.memory_space<vmem>>, vector<8x128xf32>
      %c0_12 = arith.constant 0 : index
      %c0_13 = arith.constant 0 : index
      %13 = vector.load %arg4[%c0_12, %c0_13] : memref<1x128xf32, #tpu.memory_space<vmem>>, vector<1x128xf32>
      %14 = vector.broadcast %13 : vector<1x128xf32> to vector<8x128xf32>
      %15 = arith.addf %12, %14 : vector<8x128xf32>
      %16 = arith.mulf %15, %15 : vector<8x128xf32>
      %cst_14 = arith.constant dense<0.000000e+00> : vector<8xf32>
      %17 = vector.multi_reduction <add>, %16, %cst_14 [1] : vector<8x128xf32> to vector<8xf32>
      %18 = vector.shape_cast %17 : vector<8xf32> to vector<8x1xf32>
      %cst_15 = arith.constant 1.000000e-24 : f32
      %19 = vector.broadcast %cst_15 : f32 to vector<8x1xf32>
      %20 = arith.maximumf %18, %19 : vector<8x1xf32>
      %21 = math.rsqrt %20 : vector<8x1xf32>
      %22 = vector.broadcast %21 : vector<8x1xf32> to vector<8x128xf32>
      %23 = arith.mulf %15, %22 : vector<8x128xf32>
      %24 = arith.truncf %23 : vector<8x128xf32> to vector<8x128xbf16>
      %c0_16 = arith.constant 0 : index
      %c0_17 = arith.constant 0 : index
      %25 = vector.load %arg5[%c0_16, %c0_17] : memref<8x128xbf16, #tpu.memory_space<vmem>>, vector<8x128xbf16>
      tpu.vector_store %arg5[%c0_16, %c0_17], %24 {strides = array<i32>} : memref<8x128xbf16, #tpu.memory_space<vmem>>, vector<8x128xbf16>,
    } else {
    }
    return
  }
  func.func @transform_0(%arg0: i32, %arg1: i32) -> (i32, i32) {
    %c0_i32 = arith.constant 0 : i32
    return %arg0, %arg1 : i32, i32
  }
  func.func @transform_1(%arg0: i32, %arg1: i32) -> (i32, i32) {
    %c0_i32 = arith.constant 0 : i32
    %c0_i32_0 = arith.constant 0 : i32
    return %arg1, %c0_i32 : i32, i32
  }
  func.func @transform_2(%arg0: i32, %arg1: i32) -> (i32, i32) {
    %c0_i32 = arith.constant 0 : i32
    %c0_i32_0 = arith.constant 0 : i32
    %c0_i32_1 = arith.constant 0 : i32
    return %c0_i32, %c0_i32_0 : i32, i32
  }
  func.func @transform_3(%arg0: i32, %arg1: i32) -> (i32, i32) {
    %c0_i32 = arith.constant 0 : i32
    %c0_i32_0 = arith.constant 0 : i32
    return %arg0, %c0_i32 : i32, i32
  }
}

</mosaic_0001>

<bundles_post_ra>
// kernel: tpu_custom_call.1
= control target key start
LH: loop header
LB: loop body
LE: loop exit
PB: predicated region body
PF: predicated region fallthrough
CT: control target
= control target key end

     0   :  { %8 = vsyncpa [#allocation4], 0  ;;  %s1188_s0 = inlined_call_operand.hbm [shape: bf16[8,1024], index: 0, kind: input, shape index: {}]   ;;  %s1189_s1 = inlined_call_operand.hbm [shape: bf16[1024,128], index: 1, kind: input, shape index: {}]   ;;  %s1190_s2 = inlined_call_operand.vmem [shape: f32[1,128], index: 2, kind: input, shape index: {}]   ;;  %s1191_s3 = inlined_call_operand.hbm [shape: bf16[8,128], index: 3, kind: output, shape index: {}]  }
   0x1   :  { %9 = vsyncpa [#allocation7], 0 }
   0x2   :  { %10 = vsyncpa [#allocation5], 0  ;;  %s16_s14 = sshll.u32 %s1188_s0, 4  ;;  %s1151_s15 = smov [#allocation3]   ;;  %s17_s14 = int_to_ptr.hbm [resolvable:$true] %s16_s14 }
   0x3   :  { %s18_s16 = sshll.u32 %s1151_s15, 4  ;;  %s26_s19 = sshll.u32 %s1189_s1, 4  ;;  %s19_s16 = int_to_ptr.vmem [resolvable:$true] %s18_s16  ;;  %s27_s19 = int_to_ptr.hbm [resolvable:$true] %s26_s19 }
   0x4   :  { %21 = dma.hbm_to_vmem [thread:$0]  %s17_s14, 512, %s19_s16, [#allocation4]  }
   0x5   :  { %s1152_s20 = smov [#allocation6]   ;;  %s1153_s22 = smov 64  }
   0x6   :  { %s28_s21 = sshll.u32 %s1152_s20, 4  ;;  %s1154_s23 = smov 4   ;;  %s29_s21 = int_to_ptr.vmem [resolvable:$true] %s28_s21 }
   0x7   :  { %34 = dma.hbm_to_vmem [thread:$0]  %s27_s19, 8192, %s29_s21, [#allocation7], %s1153_s22, %s1153_s22, %s1154_s23  }
   0x8   :  { %1145 = dma.done.wait [#allocation4], 512  }
   0x9   :  { %1146 = vsyncadd [#allocation4], 4294966784 }
   0xa   :  { %1147 = dma.done.wait [#allocation7], 8192  }
   0xb   :  { %1148 = vsyncadd [#allocation7], 4294959104  ;;  %v1008_v0 = vld [vmem:[#allocation6 + $0x38] sm:$0xff]  ;;  %v1007_v4 = vld [vmem:[#allocation6 + $0x30] sm:$0xff]  ;;  %s734_s27 = sshll.u32 %s1191_s3, 4  ;;  %s735_s27 = int_to_ptr.hbm [resolvable:$true] %s734_s27 }
   0xc   :  { %v1016_v1 = vld [vmem:[#allocation6 + $0x78] sm:$0xff]  ;;  %595 = vmatpush.bf16.msra.mxu0 %v1008_v0  ;;  %v1015_v5 = vld [vmem:[#allocation6 + $0x70] sm:$0xff]  ;;  %v1006_v8 = vld [vmem:[#allocation6 + $0x28] sm:$0xff] }
   0xd   :  { %v1024_v2 = vld [vmem:[#allocation6 + $0xb8] sm:$0xff]  ;;  %608 = vmatpush.bf16.msra.mxu1 %v1016_v1  ;;  %v1023_v6 = vld [vmem:[#allocation6 + $0xb0] sm:$0xff]  ;;  %v1014_v9 = vld [vmem:[#allocation6 + $0x68] sm:$0xff] }
   0xe   :  { %v1032_v3 = vld [vmem:[#allocation6 + $0xf8] sm:$0xff]  ;;  %621 = vmatpush.bf16.msra.mxu2 %v1024_v2  ;;  %v1031_v7 = vld [vmem:[#allocation6 + $0xf0] sm:$0xff]  ;;  %v1022_v10 = vld [vmem:[#allocation6 + $0xa8] sm:$0xff] }
   0xf   :  { %634 = vmatpush.bf16.msra.mxu3 %v1032_v3  ;;  %v1030_v11 = vld [vmem:[#allocation6 + $0xe8] sm:$0xff]  ;;  %v1005_v12 = vld [vmem:[#allocation6 + $0x20] sm:$0xff]  ;;  %v1004_v16 = vld [vmem:[#allocation6 + $0x18] sm:$0xff] }
  0x10   :  { %596 = vmatpush.bf16.msra.mxu0 %v1007_v4  ;;  %v1013_v13 = vld [vmem:[#allocation6 + $0x60] sm:$0xff]  ;;  %v1012_v17 = vld [vmem:[#allocation6 + $0x58] sm:$0xff]  ;;  %v1003_v20 = vld [vmem:[#allocation6 + $0x10] sm:$0xff] }
  0x11   :  { %609 = vmatpush.bf16.msra.mxu1 %v1015_v5  ;;  %v1021_v14 = vld [vmem:[#allocation6 + $0xa0] sm:$0xff]  ;;  %v1020_v18 = vld [vmem:[#allocation6 + $0x98] sm:$0xff]  ;;  %v1011_v21 = vld [vmem:[#allocation6 + $0x50] sm:$0xff] }
  0x12   :  { %622 = vmatpush.bf16.msra.mxu2 %v1023_v6  ;;  %v1029_v15 = vld [vmem:[#allocation6 + $0xe0] sm:$0xff]  ;;  %v1028_v19 = vld [vmem:[#allocation6 + $0xd8] sm:$0xff]  ;;  %v1019_v22 = vld [vmem:[#allocation6 + $0x90] sm:$0xff] }
  0x13   :  { %635 = vmatpush.bf16.msra.mxu3 %v1031_v7  ;;  %v1027_v23 = vld [vmem:[#allocation6 + $0xd0] sm:$0xff]  ;;  %v1002_v24 = vld [vmem:[#allocation6 + $0x8] sm:$0xff]  ;;  %v51_v29 = vld [vmem:[#allocation3] sm:$0xff] }
  0x14   :  { %597 = vmatpush.bf16.msra.mxu0 %v1006_v8  ;;  %v1010_v25 = vld [vmem:[#allocation6 + $0x48] sm:$0xff]  ;;  %v1001_v30 = vld [vmem:[#allocation6] sm:$0xff]  ;;  %v187_v33 = vunpack.c.l.b16 %v51_v29  ;;  %v188_v37 = vunpack.c.h.b16 %v51_v29  ;;  %v1040_v38 = vld [vmem:[#allocation6 + $0x138] sm:$0xff] }
  0x15   :  { %610 = vmatpush.bf16.msra.mxu1 %v1014_v9  ;;  %v1018_v26 = vld [vmem:[#allocation6 + $0x88] sm:$0xff]  ;;  %v1009_v31 = vld [vmem:[#allocation6 + $0x40] sm:$0xff]  ;;  %v1048_v39 = vld [vmem:[#allocation6 + $0x178] sm:$0xff] }
  0x16   :  { %623 = vmatpush.bf16.msra.mxu2 %v1022_v10  ;;  %v1026_v27 = vld [vmem:[#allocation6 + $0xc8] sm:$0xff]  ;;  %v1017_v34 = vld [vmem:[#allocation6 + $0x80] sm:$0xff]  ;;  %v1056_v40 = vld [vmem:[#allocation6 + $0x1b8] sm:$0xff]  ;;  %v195_v43 = vpack.c.b16 %v187_v33, %v187_v33  ;;  %v196_v45 = vpack.c.b16 %v188_v37, %v188_v37 }
  0x17   :  { %636 = vmatpush.bf16.msra.mxu3 %v1030_v11  ;;  %v52_v28 = vld [vmem:[#allocation3 + $0x8] sm:$0xff]  ;;  %v1025_v35 = vld [vmem:[#allocation6 + $0xc0] sm:$0xff]  ;;  %v1064_v41 = vld [vmem:[#allocation6 + $0x1f8] sm:$0xff] }
  0x18   :  { %598 = vmatpush.bf16.msra.mxu0 %v1005_v12  ;;  %v189_v32 = vunpack.c.l.b16 %v52_v28  ;;  %v190_v36 = vunpack.c.h.b16 %v52_v28  ;;  %v1039_v46 = vld [vmem:[#allocation6 + $0x130] sm:$0xff]  ;;  %v1038_v50 = vld [vmem:[#allocation6 + $0x128] sm:$0xff]  ;;  %v1037_v54 = vld [vmem:[#allocation6 + $0x120] sm:$0xff] }
  0x19   :  { %611 = vmatpush.bf16.msra.mxu1 %v1013_v13  ;;  %v1047_v47 = vld [vmem:[#allocation6 + $0x170] sm:$0xff]  ;;  %v1046_v51 = vld [vmem:[#allocation6 + $0x168] sm:$0xff]  ;;  %v1045_v55 = vld [vmem:[#allocation6 + $0x160] sm:$0xff] }
  0x1a   :  { %624 = vmatpush.bf16.msra.mxu2 %v1021_v14  ;;  %v197_v42 = vpack.c.b16 %v189_v32, %v189_v32  ;;  %v198_v44 = vpack.c.b16 %v190_v36, %v190_v36  ;;  %v1055_v48 = vld [vmem:[#allocation6 + $0x1b0] sm:$0xff]  ;;  %v1054_v52 = vld [vmem:[#allocation6 + $0x1a8] sm:$0xff]  ;;  %v1053_v56 = vld [vmem:[#allocation6 + $0x1a0] sm:$0xff] }
  0x1b   :  { %637 = vmatpush.bf16.msra.mxu3 %v1029_v15  ;;  %v1063_v49 = vld [vmem:[#allocation6 + $0x1f0] sm:$0xff]  ;;  %v1062_v53 = vld [vmem:[#allocation6 + $0x1e8] sm:$0xff]  ;;  %v1061_v57 = vld [vmem:[#allocation6 + $0x1e0] sm:$0xff] }
  0x1c   :  { %599 = vmatpush.bf16.msra.mxu0 %v1004_v16  ;;  %v1036_v58 = vld [vmem:[#allocation6 + $0x118] sm:$0xff]  ;;  %v1035_v62 = vld [vmem:[#allocation6 + $0x110] sm:$0xff]  ;;  %v1034_v2 = vld [vmem:[#allocation6 + $0x108] sm:$0xff] }
  0x1d   :  { %612 = vmatpush.bf16.msra.mxu1 %v1012_v17  ;;  %v1044_v59 = vld [vmem:[#allocation6 + $0x158] sm:$0xff]  ;;  %v1043_v63 = vld [vmem:[#allocation6 + $0x150] sm:$0xff]  ;;  %v1042_v3 = vld [vmem:[#allocation6 + $0x148] sm:$0xff] }
  0x1e   :  { %625 = vmatpush.bf16.msra.mxu2 %v1020_v18  ;;  %v1052_v60 = vld [vmem:[#allocation6 + $0x198] sm:$0xff]  ;;  %v1051_v0 = vld [vmem:[#allocation6 + $0x190] sm:$0xff]  ;;  %v1050_v5 = vld [vmem:[#allocation6 + $0x188] sm:$0xff] }
  0x1f   :  { %638 = vmatpush.bf16.msra.mxu3 %v1028_v19  ;;  %v1060_v61 = vld [vmem:[#allocation6 + $0x1d8] sm:$0xff]  ;;  %v1059_v1 = vld [vmem:[#allocation6 + $0x1d0] sm:$0xff]  ;;  %v1058_v6 = vld [vmem:[#allocation6 + $0x1c8] sm:$0xff] }
  0x20   :  { %600 = vmatpush.bf16.msra.mxu0 %v1003_v20  ;;  %v53_v4 = vld [vmem:[#allocation3 + $0x10] sm:$0xff]  ;;  %v54_v7 = vld [vmem:[#allocation3 + $0x18] sm:$0xff]  ;;  %v1033_v10 = vld [vmem:[#allocation6 + $0x100] sm:$0xff] }
  0x21   :  { %613 = vmatpush.bf16.msra.mxu1 %v1011_v21  ;;  %v191_v8 = vunpack.c.l.b16 %v53_v4  ;;  %v192_v9 = vunpack.c.h.b16 %v53_v4  ;;  %v1041_v11 = vld [vmem:[#allocation6 + $0x140] sm:$0xff]  ;;  %v193_v12 = vunpack.c.l.b16 %v54_v7  ;;  %v194_v13 = vunpack.c.h.b16 %v54_v7 }
  0x22   :  { %626 = vmatpush.bf16.msra.mxu2 %v1019_v22  ;;  %v1049_v14 = vld [vmem:[#allocation6 + $0x180] sm:$0xff] }
  0x23   :  { %639 = vmatpush.bf16.msra.mxu3 %v1027_v23  ;;  %v1057_v15 = vld [vmem:[#allocation6 + $0x1c0] sm:$0xff]  ;;  %v199_v16 = vpack.c.b16 %v191_v8, %v191_v8  ;;  %v200_v17 = vpack.c.b16 %v192_v9, %v192_v9  ;;  %v201_v18 = vpack.c.b16 %v193_v12, %v193_v12  ;;  %v202_v19 = vpack.c.b16 %v194_v13, %v194_v13 }
  0x24   :  { %601 = vmatpush.bf16.msra.mxu0 %v1002_v24 }
  0x25   :  { %614 = vmatpush.bf16.msra.mxu1 %v1010_v25 }
  0x26   :  { %627 = vmatpush.bf16.msra.mxu2 %v1018_v26 }
  0x27   :  { %640 = vmatpush.bf16.msra.mxu3 %v1026_v27 }
  0x28   :  { %602 = vmatpush.bf16.msra.mxu0 %v1001_v30 }
  0x29   :  { %615 = vmatpush.bf16.msra.mxu1 %v1009_v31 }
  0x2a   :  { %628 = vmatpush.bf16.msra.mxu2 %v1017_v34 }
  0x2b   :  { %641 = vmatpush.bf16.msra.mxu3 %v1025_v35  ;;  %603 = vmatmul.bf16.vlgmr.msra.gmra.mxu0 %v195_v43 }
  0x2c   :  { %647 = vmatpush.bf16.msrb.mxu0 %v1040_v38  ;;  %616 = vmatmul.bf16.vlgmr.msra.gmra.mxu1 %v196_v45 }
  0x2d   :  { %660 = vmatpush.bf16.msrb.mxu1 %v1048_v39  ;;  %629 = vmatmul.bf16.vlgmr.msra.gmra.mxu2 %v197_v42 }
  0x2e   :  { %673 = vmatpush.bf16.msrb.mxu2 %v1056_v40  ;;  %642 = vmatmul.bf16.vlgmr.msra.gmra.mxu3 %v198_v44  ;;  %v1070_v40 = vld [vmem:[%s1190_s2] ss:$0 sm:$0xff]  ;;  %s1155_s2 = smov [#allocation8]  }
  0x2f   :  { %686 = vmatpush.bf16.msrb.mxu3 %v1064_v41  ;;  %s732_s24 = sshll.u32 %s1155_s2, 4  ;;  %s733_s24 = int_to_ptr.vmem [resolvable:$true] %s732_s24 }
  0x30   :  { %648 = vmatpush.bf16.msrb.mxu0 %v1039_v46 }
  0x31   :  { %661 = vmatpush.bf16.msrb.mxu1 %v1047_v47 }
  0x32   :  { %674 = vmatpush.bf16.msrb.mxu2 %v1055_v48 }
  0x33   :  { %687 = vmatpush.bf16.msrb.mxu3 %v1063_v49 }
  0x34   :  { %649 = vmatpush.bf16.msrb.mxu0 %v1038_v50 }
  0x35   :  { %662 = vmatpush.bf16.msrb.mxu1 %v1046_v51 }
  0x36   :  { %675 = vmatpush.bf16.msrb.mxu2 %v1054_v52 }
  0x37   :  { %688 = vmatpush.bf16.msrb.mxu3 %v1062_v53 }
  0x38   :  { %650 = vmatpush.bf16.msrb.mxu0 %v1037_v54 }
  0x39   :  { %663 = vmatpush.bf16.msrb.mxu1 %v1045_v55 }
  0x3a   :  { %676 = vmatpush.bf16.msrb.mxu2 %v1053_v56 }
  0x3b   :  { %689 = vmatpush.bf16.msrb.mxu3 %v1061_v57 }
  0x3c   :  { %651 = vmatpush.bf16.msrb.mxu0 %v1036_v58 }
  0x3d   :  { %664 = vmatpush.bf16.msrb.mxu1 %v1044_v59 }
  0x3e   :  { %677 = vmatpush.bf16.msrb.mxu2 %v1052_v60 }
  0x3f   :  { %690 = vmatpush.bf16.msrb.mxu3 %v1060_v61 }
  0x40   :  { %652 = vmatpush.bf16.msrb.mxu0 %v1035_v62 }
  0x41   :  { %665 = vmatpush.bf16.msrb.mxu1 %v1043_v63 }
  0x42   :  { %678 = vmatpush.bf16.msrb.mxu2 %v1051_v0 }
  0x43   :  { %691 = vmatpush.bf16.msrb.mxu3 %v1059_v1 }
  0x44   :  { %653 = vmatpush.bf16.msrb.mxu0 %v1034_v2 }
  0x45   :  { %666 = vmatpush.bf16.msrb.mxu1 %v1042_v3 }
  0x46   :  { %679 = vmatpush.bf16.msrb.mxu2 %v1050_v5 }
  0x47   :  { %692 = vmatpush.bf16.msrb.mxu3 %v1058_v6 }
  0x48   :  { %654 = vmatpush.bf16.msrb.mxu0 %v1033_v10 }
  0x49   :  { %667 = vmatpush.bf16.msrb.mxu1 %v1041_v11 }
  0x4a   :  { %680 = vmatpush.bf16.msrb.mxu2 %v1049_v14 }
  0x4b   :  { %693 = vmatpush.bf16.msrb.mxu3 %v1057_v15  ;;  %655 = vmatmul.bf16.vlgmr.msrb.gmra.mxu0 %v199_v16 }
  0x4c   :  { %668 = vmatmul.bf16.vlgmr.msrb.gmra.mxu1 %v200_v17 }
  0x4d   :  { %681 = vmatmul.bf16.vlgmr.msrb.gmra.mxu2 %v201_v18 }
  0x4e   :  { %694 = vmatmul.bf16.vlgmr.msrb.gmra.mxu3 %v202_v19 }
  0xa8   :  { %v604_v20 = vpop.f32.mrf.mxu0 }
  0xa9   :  { %v617_v21 = vpop.f32.mrf.mxu1 }
  0xaa   :  { %v618_v28 = vadd.f32 %v617_v21, %v604_v20 }
  0xb0   :  { %v630_v22 = vpop.f32.mrf.mxu2  ;;  %v606_v24 = vpop.f32.mrf.mxu0 }
  0xb1   :  { %v643_v23 = vpop.f32.mrf.mxu3  ;;  %v619_v25 = vpop.f32.mrf.mxu1  ;;  %v631_v29 = vadd.f32 %v630_v22, %v618_v28 }
  0xb3   :  { %v644_v30 = vadd.f32 %v643_v23, %v631_v29 }
  0xb8   :  { %v632_v26 = vpop.f32.mrf.mxu2 }
  0xb9   :  { %v645_v27 = vpop.f32.mrf.mxu3 }
  0xc8   :  { %v656_v31 = vpop.f32.mrf.mxu0 }
  0xc9   :  { %v669_v32 = vpop.f32.mrf.mxu1  ;;  %v657_v33 = vadd.f32 %v656_v31, %v644_v30 }
  0xcb   :  { %v670_v34 = vadd.f32 %v669_v32, %v657_v33 }
  0xd0   :  { %v682_v35 = vpop.f32.mrf.mxu2  ;;  %v658_v38 = vpop.f32.mrf.mxu0 }
  0xd1   :  { %v695_v36 = vpop.f32.mrf.mxu3  ;;  %v683_v37 = vadd.f32 %v682_v35, %v670_v34  ;;  %v671_v39 = vpop.f32.mrf.mxu1 }
  0xd3   :  { %v696_v41 = vadd.f32 %v695_v36, %v683_v37 }
  0xd5   :  { %v709_v42 = vadd.f32 %v1070_v40, %v696_v41 }
  0xd7   :  { %v710_v43 = vmul.f32 %v709_v42, %v709_v42 }
  0xd8   :  { %v684_v44 = vpop.f32.mrf.mxu2 }
  0xd9   :  { %v697_v45 = vpop.f32.mrf.mxu3  ;;  %711 = vadd.xlane.f32.xlu0 %v710_v43 }
 0x14c   :  { %v712_v46 = vpop.xlane.xlu0 %711 }
 0x14d   :  { %v713_v47 = vmax.f32 %v712_v46, 1e-24 }
 0x14f   :  { %1071 = vrsqrt.f32 %v713_v47  ;;  %vm720_vm1 = vweird.f32 %v713_v47 }
 0x155   :  { %v1072_v48 = vpop.eup %1071 }
 0x156   :  { %v715_v49 = vmul.f32 %v1072_v48, %v713_v47  ;;  %vm721_vm0 = vweird.f32 %v1072_v48 }
 0x157   :  { %vm722_vm2 = vmor %vm720_vm1, %vm721_vm0 }
 0x158   :  { %v716_v50 = vmul.f32 %v1072_v48, %v715_v49 }
 0x15a   :  { %v717_v51 = vmul.f32 0.5, %v716_v50 }
 0x15c   :  { %v718_v52 = vsub.f32 1.5, %v717_v51 }
 0x15e   :  { %v719_v53 = vmul.f32 %v1072_v48, %v718_v52 }
 0x160   :  { %v723_v54 = vsel %vm722_vm2, %v1072_v48, %v719_v53 }
 0x161   :  { %v724_v55 = vmul.f32 %v723_v54, %v709_v42 }
 0x163   :  { %v725_v56 = vpack.c.bf16 %v724_v55, %v724_v55 }
 0x165   :  { %726 = vst [vmem:[#allocation8] sm:$0xf] %v725_v56 }
 0x166   :  { %737 = dma.vmem_to_hbm [thread:$0]  %s733_s24, 64, %s735_s27, [#allocation5]  }
 0x167   :  { %1149 = dma.done.wait [#allocation5], 64  }
 0x168   :  { %1150 = vsyncadd [#allocation5], 4294967232 }
 0x169   :  { %742 = vsyncpa [#allocation4], 1 }
 0x16a   :  { %743 = vsyncpa [#allocation7], 1 }
 0x16b   :  { %744 = vsyncpa [#allocation5], 1 }

</bundles_post_ra>
